<compile_context>
chip_gen: v5e
topology: v5e:2x2
jax: 0.10.0
libtpu: 0.0.40
codegen_flags: <defaults>
</compile_context>

<pallas_src>
import functools

import jax
import jax.numpy as jnp
from jax.experimental import pallas as pl
from jax.experimental.pallas import tpu as pltpu


def _round_up(x, m):
    return ((x + m - 1) // m) * m


def _fused_tile_loss(s, keep_b, valid_col, pmask, row_valid, *, scale, inv_na):
    """Fused per-row SupCon term; returns this tile's (already /Na) partial sum."""
    minus_big = jnp.float32(-1e30)
    # Row max over *real* contrast columns only (identical to the reference,
    # which never sees padded columns).
    row_max = jnp.max(jnp.where(valid_col, s, minus_big), axis=1, keepdims=True)
    exp_logits = jnp.where(keep_b, jnp.exp(s - row_max), 0.0)
    denom = jnp.maximum(jnp.sum(exp_logits, axis=1, keepdims=True), 1e-30)

    if pmask.dtype == jnp.bool_:
        pos_s = jnp.sum(jnp.where(pmask, s, 0.0), axis=1, keepdims=True)
        pos_cnt = jnp.sum(pmask.astype(jnp.float32), axis=1, keepdims=True)
    else:  # explicit (possibly non-binary) float mask
        pos_s = jnp.sum(pmask * s, axis=1, keepdims=True)
        pos_cnt = jnp.sum(pmask, axis=1, keepdims=True)

    num = pos_s - pos_cnt * (row_max + jnp.log(denom))
    # pos_cnt == 0 rows (padded rows / degenerate labels) contribute exactly 0
    # (num == 0 there); the PyTorch reference would produce NaN for a *real*
    # row with no positives.
    mean_lpp = num / jnp.where(pos_cnt > 0.0, pos_cnt, 1.0)
    mean_lpp = jnp.where(row_valid, mean_lpp, 0.0)
    return (-scale * inv_na) * jnp.sum(mean_lpp)


def _dot_scaled(a, c, inv_temperature):
    """s[i, j] = <a_i, c_j> / T, contracting the LAST dim of both operands."""
    if a.dtype == jnp.bfloat16:
        # bf16 straight to the MXU (f32 accumulation); apply 1/T to the f32
        # product so the temperature scale is not quantized to bf16.
        s = jax.lax.dot_general(a, c, (((1,), (1,)), ((), ())),
                                preferred_element_type=jnp.float32)
        return s * inv_temperature
    # f32: fold 1/T into the small [tm, D] operand; default MXU precision
    # (Precision.HIGHEST on f32 costs 3-6x the vmatmul count).
    return jax.lax.dot_general(a * inv_temperature, c,
                               (((1,), (1,)), ((), ())),
                               preferred_element_type=jnp.float32)


def _supcon_labels_kernel(a_ref, c_ref, alab_ref, clab_ref, out_ref, *,
                          inv_temperature, scale, na, nc, inv_na):
    """Labels / SimCLR path: positives mask rebuilt from label equality."""
    pid = pl.program_id(0)
    tm = a_ref.shape[0]
    ncp = c_ref.shape[0]

    s = _dot_scaled(a_ref[...], c_ref[...], inv_temperature)

    row_ids = jax.lax.broadcasted_iota(jnp.int32, (tm, 1), 0) + pid * tm
    col_ids = jax.lax.broadcasted_iota(jnp.int32, (1, ncp), 1)

    valid_col = col_ids < nc                                  # real contrast cols
    keep_b = jnp.logical_and(row_ids != col_ids, valid_col)   # drop self-contrast
    pmask_b = jnp.logical_and(alab_ref[...] == clab_ref[...], keep_b)
    row_valid = row_ids < na

    out_ref[0, 0] = _fused_tile_loss(s, keep_b, valid_col, pmask_b, row_valid,
                                     scale=scale, inv_na=inv_na)


def _supcon_dense_kernel(a_ref, c_ref, pmask_ref, out_ref, *,
                         inv_temperature, scale, na, nc, inv_na):
    """Explicit `mask=` fallback: dense (possibly non-binary) positives mask."""
    pid = pl.program_id(0)
    tm = a_ref.shape[0]
    ncp = c_ref.shape[0]

    s = _dot_scaled(a_ref[...], c_ref[...], inv_temperature)

    row_ids = jax.lax.broadcasted_iota(jnp.int32, (tm, 1), 0) + pid * tm
    col_ids = jax.lax.broadcasted_iota(jnp.int32, (1, ncp), 1)
    valid_col = col_ids < nc
    keep_b = jnp.logical_and(row_ids != col_ids, valid_col)
    row_valid = row_ids < na

    out_ref[0, 0] = _fused_tile_loss(s, keep_b, valid_col, pmask_ref[...],
                                     row_valid, scale=scale, inv_na=inv_na)


def supcon_loss(features, labels=None, mask=None, *, temperature=0.07,
                contrast_mode='all', base_temperature=0.07, block_rows=128):
    """JAX/Pallas equivalent of SupConLoss.forward (returns a scalar loss)."""
    features = jnp.asarray(features)
    if features.ndim < 3:
        raise ValueError('`features` needs to be [bsz, n_views, ...], '
                         'at least 3 dimensions are required')
    if features.ndim > 3:
        features = features.reshape(features.shape[0], features.shape[1], -1)
    bsz, n_views, dim = features.shape

    if labels is not None and mask is not None:
        raise ValueError('Cannot define both `labels` and `mask`')

    # bf16 inputs stay bf16 (straight to the MXU, f32 accumulation); everything
    # else computes in f32.
    compute_dtype = jnp.bfloat16 if features.dtype == jnp.bfloat16 else jnp.float32
    features = features.astype(compute_dtype)

    contrast_count = n_views
    # torch.cat(torch.unbind(features, dim=1), dim=0): view-major concat -> [Nc, D]
    contrast_feature = jnp.concatenate([features[:, v] for v in range(n_views)],
                                       axis=0)
    if contrast_mode == 'one':
        anchor_feature = features[:, 0]
        anchor_count = 1
    elif contrast_mode == 'all':
        anchor_feature = contrast_feature
        anchor_count = contrast_count
    else:
        raise ValueError('Unknown mode: {}'.format(contrast_mode))

    na = anchor_count * bsz
    nc = contrast_count * bsz

    # ----- TPU-friendly padding / tiling ----------------------------------
    mult = 16 if compute_dtype == jnp.bfloat16 else 8        # sublane packing
    tm = _round_up(min(block_rows, _round_up(na, mult)), mult)
    nc_pad = _round_up(nc, 128)                              # lane dim of logits/masks
    d_pad = _round_up(dim, 128)                              # lane dim of features (MXU K)
    itemsize = jnp.dtype(compute_dtype).itemsize

    # Generation-aware VMEM budget (v7x: 64 MiB, v5e/v6e: 128 MiB).
    try:
        info = pltpu.get_tpu_info()
        vmem_cap = int(getattr(info, "vmem_capacity_bytes", 128 * 1024 * 1024))
    except Exception:
        vmem_cap = 128 * 1024 * 1024
    vmem_budget = int(vmem_cap * 0.80)

    def _vmem_estimate(tm_):
        resident = nc_pad * d_pad * itemsize + nc_pad * 4    # single-buffered operands
        streamed = 2 * tm_ * (d_pad * itemsize + 4)          # double-buffered anchor tiles
        if mask is not None:
            streamed += 2 * tm_ * nc_pad * 4                 # streamed dense mask
        interm = 6 * tm_ * nc_pad * 4                        # full-width f32/bool temps
        return resident + streamed + interm + (2 << 20)

    # Auto-shrink the anchor-row tile until the kernel fits this chip's VMEM.
    while _vmem_estimate(tm) > vmem_budget and tm > mult:
        tm = max(mult, _round_up(tm // 2, mult))

    na_pad = _round_up(na, tm)
    grid = (na_pad // tm,)
    num_tiles = grid[0]
    vmem_limit = int(min(vmem_cap * 0.85,
                         max(_vmem_estimate(tm), 32 * 1024 * 1024)))

    anchor_p = jnp.pad(anchor_feature, ((0, na_pad - na), (0, d_pad - dim)))
    contrast_p = jnp.pad(contrast_feature, ((0, nc_pad - nc), (0, d_pad - dim)))

    bytes_accessed = ((na_pad * d_pad + nc_pad * d_pad) * itemsize
                      + (na_pad + nc_pad) * 4 + num_tiles * 4)
    if mask is not None:
        bytes_accessed += na_pad * nc_pad * 4
    cost = pl.CostEstimate(flops=2 * na_pad * nc_pad * d_pad,
                           transcendentals=na_pad * nc_pad,
                           bytes_accessed=bytes_accessed)

    compiler_params = pltpu.CompilerParams(
        # Per-tile partial sums -> the row-tile axis is independent ("parallel"),
        # so v7x can shard it across its two TensorCores.
        dimension_semantics=("parallel",),
        vmem_limit_bytes=vmem_limit,
    )
    # One f32 partial sum per tile, summed outside the kernel.
    out_shape = jax.ShapeDtypeStruct((num_tiles, 1), jnp.float32)
    out_spec = pl.BlockSpec((1, 1), lambda i: (i, 0),
                            memory_space=pltpu.MemorySpace.SMEM)

    kern_kwargs = dict(inv_temperature=1.0 / float(temperature),
                       scale=float(temperature) / float(base_temperature),
                       na=na, nc=nc, inv_na=1.0 / na)

    if mask is None:
        # labels case, or SimCLR (eye mask == identity labels).
        if labels is None:
            base_lab = jnp.arange(bsz, dtype=jnp.int32)
        else:
            base_lab = jnp.asarray(labels).reshape(-1).astype(jnp.int32)
            if base_lab.shape[0] != bsz:
                raise ValueError('Num of labels does not match num of features')
        clab = jnp.tile(base_lab, contrast_count)              # contrast-row labels
        alab = clab if contrast_mode == 'all' else base_lab    # anchor-row labels
        alab_p = jnp.full((na_pad, 1), -1, jnp.int32).at[:na, 0].set(alab)
        clab_p = jnp.full((1, nc_pad), -2, jnp.int32).at[0, :nc].set(clab)

        kernel = functools.partial(_supcon_labels_kernel, **kern_kwargs)
        out = pl.pallas_call(
            kernel,
            out_shape=out_shape,
            grid=grid,
            in_specs=[
                pl.BlockSpec((tm, d_pad), lambda i: (i, 0)),       # anchor row tile
                pl.BlockSpec((nc_pad, d_pad), lambda i: (0, 0),    # contrast (resident,
                             pipeline_mode=pl.Buffered(1)),        #  single-buffered)
                pl.BlockSpec((tm, 1), lambda i: (i, 0)),           # anchor labels
                pl.BlockSpec((1, nc_pad), lambda i: (0, 0),        # contrast labels
                             pipeline_mode=pl.Buffered(1)),
            ],
            out_specs=out_spec,
            compiler_params=compiler_params,
            cost_estimate=cost,
        )(anchor_p, contrast_p, alab_p, clab_p)
    else:
        # Explicit-mask fallback: arbitrary / asymmetric / non-binary masks.
        base_mask = jnp.asarray(mask, dtype=jnp.float32)
        full_mask = jnp.tile(base_mask, (anchor_count, contrast_count))
        rows = jnp.arange(na)[:, None]
        cols = jnp.arange(nc)[None, :]
        full_mask = full_mask * (rows != cols).astype(jnp.float32)
        pmask_p = jnp.pad(full_mask, ((0, na_pad - na), (0, nc_pad - nc)))

        kernel = functools.partial(_supcon_dense_kernel, **kern_kwargs)
        out = pl.pallas_call(
            kernel,
            out_shape=out_shape,
            grid=grid,
            in_specs=[
                pl.BlockSpec((tm, d_pad), lambda i: (i, 0)),
                pl.BlockSpec((nc_pad, d_pad), lambda i: (0, 0),
                             pipeline_mode=pl.Buffered(1)),
                pl.BlockSpec((tm, nc_pad), lambda i: (i, 0)),
            ],
            out_specs=out_spec,
            compiler_params=compiler_params,
            cost_estimate=cost,
        )(anchor_p, contrast_p, pmask_p)

    return jnp.sum(out)


def supcon_loss_ref(features, labels=None, mask=None, *, temperature=0.07,
                    contrast_mode='all', base_temperature=0.07):
    """Pure-JAX reference mirroring the PyTorch code, for verification."""
    features = jnp.asarray(features, jnp.float32)
    bsz, n_views = features.shape[0], features.shape[1]
    feats = features.reshape(bsz, n_views, -1)
    if labels is None and mask is None:
        m = jnp.eye(bsz, dtype=jnp.float32)
    elif labels is not None:
        lab = jnp.asarray(labels).reshape(-1, 1)
        m = (lab == lab.T).astype(jnp.float32)
    else:
        m = jnp.asarray(mask, jnp.float32)
    cf = jnp.concatenate([feats[:, v] for v in range(n_views)], axis=0)
    if contrast_mode == 'one':
        af, ac = feats[:, 0], 1
    else:
        af, ac = cf, n_views
    na, nc = ac * bsz, n_views * bsz
    s = jnp.matmul(af, cf.T, precision=jax.lax.Precision.HIGHEST) / temperature
    logits = s - jnp.max(s, axis=1, keepdims=True)
    lm = 1.0 - (jnp.arange(na)[:, None] == jnp.arange(nc)[None, :]).astype(jnp.float32)
    m = jnp.tile(m, (ac, n_views)) * lm
    exp_logits = jnp.exp(logits) * lm
    log_prob = logits - jnp.log(exp_logits.sum(1, keepdims=True))
    mlpp = (m * log_prob).sum(1) / m.sum(1)
    loss = -(temperature / base_temperature) * mlpp
    return loss.reshape(ac, bsz).mean()


if __name__ == "__main__":
    key = jax.random.PRNGKey(0)
    k_feat, k_lab, k_feat2, k_lab2 = jax.random.split(key, 4)

    # Case 1: small supervised + SimCLR, f32, single row tile.
    bsz, n_views, dim = 8, 2, 32
    feats = jax.random.normal(k_feat, (bsz, n_views, dim), jnp.float32)
    feats = feats / jnp.linalg.norm(feats, axis=-1, keepdims=True)
    labels = jax.random.randint(k_lab, (bsz,), 0, 4)

    for lab in (labels, None):
        got = jax.block_until_ready(supcon_loss(feats, labels=lab))
        want = supcon_loss_ref(feats, labels=lab)
        assert jnp.allclose(got, want, atol=1e-4, rtol=1e-4), (got, want)

    # contrast_mode='one'
    got = jax.block_until_ready(supcon_loss(feats, labels=labels, contrast_mode='one'))
    want = supcon_loss_ref(feats, labels=labels, contrast_mode='one')
    assert jnp.allclose(got, want, atol=1e-4, rtol=1e-4), (got, want)

    # Explicit-mask path (dense fallback kernel).
    emask = (labels[:, None] == labels[None, :]).astype(jnp.float32)
    got = jax.block_until_ready(supcon_loss(feats, mask=emask))
    want = supcon_loss_ref(feats, mask=emask)
    assert jnp.allclose(got, want, atol=1e-4, rtol=1e-4), (got, want)

    # Case 2: odd sizes -> multi-tile grid + row/col/D padding, f32.
    bsz2, nv2, d2 = 13, 2, 48
    feats2 = jax.random.normal(k_feat2, (bsz2, nv2, d2), jnp.float32)
    feats2 = feats2 / jnp.linalg.norm(feats2, axis=-1, keepdims=True)
    labels2 = jax.random.randint(k_lab2, (bsz2,), 0, 3)
    got = jax.block_until_ready(supcon_loss(feats2, labels=labels2, block_rows=8))
    want = supcon_loss_ref(feats2, labels=labels2)
    assert jnp.allclose(got, want, atol=1e-4, rtol=1e-4), (got, want)

    # Case 3: bf16 features feed the MXU directly (f32 softmax math in-kernel);
    # loose tolerance vs. the f32 reference.
    got_bf16 = jax.block_until_ready(supcon_loss(feats.astype(jnp.bfloat16),
                                                 labels=labels))
    want = supcon_loss_ref(feats, labels=labels)
    assert jnp.isfinite(got_bf16)
    assert jnp.allclose(got_bf16, want, atol=2e-1, rtol=0.0), (got_bf16, want)

    print("KERNEL_OK")
</pallas_src>

<mosaic_0001>
module attributes {stable_mosaic.version = 11 : i64} {
  func.func @_supcon_labels_kernel(%arg0: i32, %arg1: memref<16x128xf32, #tpu.memory_space<vmem>>, %arg2: memref<128x128xf32, #tpu.memory_space<vmem>>, %arg3: memref<16x1xi32, #tpu.memory_space<vmem>>, %arg4: memref<1x128xi32, #tpu.memory_space<vmem>>, %arg5: memref<1x1xf32, #tpu.memory_space<smem>>) attributes {dimension_semantics = [#tpu.dimension_semantics<parallel>], iteration_bounds = array<i64: 1>, scalar_prefetch = 0 : i64, scratch_operands = 0 : i64, tpu.core_type = #tpu.core_type<tc>, window_params = [{transform_indices = @transform_0, window_bounds = array<i64: 16, 128>}, {pipeline_mode = #tpu.pipeline_mode<synchronous>, transform_indices = @transform_1, window_bounds = array<i64: 128, 128>}, {transform_indices = @transform_2, window_bounds = array<i64: 16, 1>}, {pipeline_mode = #tpu.pipeline_mode<synchronous>, transform_indices = @transform_3, window_bounds = array<i64: 1, 128>}, {transform_indices = @transform_4, window_bounds = array<i64: 1, 1>}]} {
    %c0 = arith.constant 0 : index
    %c0_0 = arith.constant 0 : index
    %0 = vector.load %arg1[%c0, %c0_0] : memref<16x128xf32, #tpu.memory_space<vmem>>, vector<16x128xf32>
    %c0_1 = arith.constant 0 : index
    %c0_2 = arith.constant 0 : index
    %1 = vector.load %arg2[%c0_1, %c0_2] : memref<128x128xf32, #tpu.memory_space<vmem>>, vector<128x128xf32>
    %cst = arith.constant 14.2857141 : f32
    %2 = vector.broadcast %cst : f32 to vector<16x128xf32>
    %3 = arith.mulf %0, %2 : vector<16x128xf32>
    %cst_3 = arith.constant dense<0.000000e+00> : vector<16x128xf32>
    %4 = tpu.matmul %3, %1, %cst_3 {dimension_numbers = #tpu.dot_dimension_numbers<[1], [1], [0], [0], [0, 0, 1, 0], [], []>} : vector<16x128xf32>, vector<128x128xf32>, vector<16x128xf32> -> vector<16x128xf32>
    %5 = tpu.iota {dimensions = array<i32: 0>} : vector<16x1xi32>
    %c16_i32 = arith.constant 16 : i32
    %6 = arith.muli %arg0, %c16_i32 : i32
    %7 = vector.broadcast %6 : i32 to vector<16x1xi32>
    %8 = arith.addi %5, %7 : vector<16x1xi32>
    %9 = tpu.iota {dimensions = array<i32: 1>} : vector<1x128xi32>
    %c16_i32_4 = arith.constant 16 : i32
    %10 = vector.broadcast %c16_i32_4 : i32 to vector<1x128xi32>
    %11 = arith.cmpi slt, %9, %10 : vector<1x128xi32>
    %12 = vector.broadcast %8 : vector<16x1xi32> to vector<16x128xi32>
    %13 = vector.broadcast %9 : vector<1x128xi32> to vector<16x128xi32>
    %14 = arith.cmpi ne, %12, %13 : vector<16x128xi32>
    %15 = vector.broadcast %11 : vector<1x128xi1> to vector<16x128xi1>
    %16 = arith.andi %14, %15 : vector<16x128xi1>
    %c0_5 = arith.constant 0 : index
    %c0_6 = arith.constant 0 : index
    %17 = vector.load %arg3[%c0_5, %c0_6] : memref<16x1xi32, #tpu.memory_space<vmem>>, vector<16x1xi32>
    %c0_7 = arith.constant 0 : index
    %c0_8 = arith.constant 0 : index
    %18 = vector.load %arg4[%c0_7, %c0_8] : memref<1x128xi32, #tpu.memory_space<vmem>>, vector<1x128xi32>
    %19 = vector.broadcast %17 : vector<16x1xi32> to vector<16x128xi32>
    %20 = vector.broadcast %18 : vector<1x128xi32> to vector<16x128xi32>
    %21 = arith.cmpi eq, %19, %20 : vector<16x128xi32>
    %22 = arith.andi %21, %16 : vector<16x128xi1>
    %c16_i32_9 = arith.constant 16 : i32
    %23 = vector.broadcast %c16_i32_9 : i32 to vector<16x1xi32>
    %24 = arith.cmpi slt, %8, %23 : vector<16x1xi32>
    %cst_10 = arith.constant -1.000000e+30 : f32
    %25 = vector.shape_cast %11 : vector<1x128xi1> to vector<1x128xi1>
    %26 = vector.broadcast %25 : vector<1x128xi1> to vector<16x128xi1>
    %27 = vector.broadcast %cst_10 : f32 to vector<16x128xf32>
    %28 = arith.select %26, %4, %27 : vector<16x128xi1>, vector<16x128xf32>
    %cst_11 = arith.constant dense<0xFF800000> : vector<16xf32>
    %29 = vector.multi_reduction <maximumf>, %28, %cst_11 [1] : vector<16x128xf32> to vector<16xf32>
    %30 = vector.shape_cast %29 : vector<16xf32> to vector<16x1xf32>
    %31 = vector.broadcast %30 : vector<16x1xf32> to vector<16x128xf32>
    %32 = arith.subf %4, %31 : vector<16x128xf32>
    %33 = math.exp %32 : vector<16x128xf32>
    %cst_12 = arith.constant 0.000000e+00 : f32
    %34 = vector.broadcast %cst_12 : f32 to vector<16x128xf32>
    %35 = arith.select %16, %33, %34 : vector<16x128xi1>, vector<16x128xf32>
    %cst_13 = arith.constant dense<0.000000e+00> : vector<16xf32>
    %36 = vector.multi_reduction <add>, %35, %cst_13 [1] : vector<16x128xf32> to vector<16xf32>
    %37 = vector.shape_cast %36 : vector<16xf32> to vector<16x1xf32>
    %cst_14 = arith.constant 1.000000e-30 : f32
    %38 = vector.broadcast %cst_14 : f32 to vector<16x1xf32>
    %39 = arith.maximumf %37, %38 : vector<16x1xf32>
    %cst_15 = arith.constant 0.000000e+00 : f32
    %40 = vector.broadcast %cst_15 : f32 to vector<16x128xf32>
    %41 = arith.select %22, %4, %40 : vector<16x128xi1>, vector<16x128xf32>
    %cst_16 = arith.constant dense<0.000000e+00> : vector<16xf32>
    %42 = vector.multi_reduction <add>, %41, %cst_16 [1] : vector<16x128xf32> to vector<16xf32>
    %43 = vector.shape_cast %42 : vector<16xf32> to vector<16x1xf32>
    %44 = arith.extui %22 : vector<16x128xi1> to vector<16x128xi32>
    %45 = arith.sitofp %44 : vector<16x128xi32> to vector<16x128xf32>
    %cst_17 = arith.constant dense<0.000000e+00> : vector<16xf32>
    %46 = vector.multi_reduction <add>, %45, %cst_17 [1] : vector<16x128xf32> to vector<16xf32>
    %47 = vector.shape_cast %46 : vector<16xf32> to vector<16x1xf32>
    %48 = math.log %39 : vector<16x1xf32>
    %49 = arith.addf %30, %48 : vector<16x1xf32>
    %50 = arith.mulf %47, %49 : vector<16x1xf32>
    %51 = arith.subf %43, %50 : vector<16x1xf32>
    %cst_18 = arith.constant 0.000000e+00 : f32
    %52 = vector.broadcast %cst_18 : f32 to vector<16x1xf32>
    %53 = arith.cmpf ogt, %47, %52 : vector<16x1xf32>
    %cst_19 = arith.constant 1.000000e+00 : f32
    %54 = vector.broadcast %cst_19 : f32 to vector<16x1xf32>
    %55 = arith.select %53, %47, %54 : vector<16x1xi1>, vector<16x1xf32>
    %56 = arith.divf %51, %55 : vector<16x1xf32>
    %cst_20 = arith.constant 0.000000e+00 : f32
    %57 = vector.broadcast %cst_20 : f32 to vector<16x1xf32>
    %58 = arith.select %24, %56, %57 : vector<16x1xi1>, vector<16x1xf32>
    %59 = vector.shape_cast %58 : vector<16x1xf32> to vector<1x16x1xf32>
    %cst_21 = arith.constant dense<0.000000e+00> : vector<1xf32>
    %60 = vector.multi_reduction <add>, %59, %cst_21 [1, 2] : vector<1x16x1xf32> to vector<1xf32>
    %61 = vector.shape_cast %60 : vector<1xf32> to vector<1x1x1xf32>
    %62 = vector.extract %61[0, 0, 0] : f32 from vector<1x1x1xf32>
    %cst_22 = arith.constant -6.250000e-02 : f32
    %63 = arith.mulf %cst_22, %62 : f32
    %c0_23 = arith.constant 0 : index
    %c0_24 = arith.constant 0 : index
    %64 = memref.load %arg5[%c0_23, %c0_24] : memref<1x1xf32, #tpu.memory_space<smem>>
    memref.store %63, %arg5[%c0_23, %c0_24] : memref<1x1xf32, #tpu.memory_space<smem>>
    return
  }
  func.func @transform_0(%arg0: i32) -> (i32, i32) {
    %c0_i32 = arith.constant 0 : i32
    %c0_i32_0 = arith.constant 0 : i32
    return %arg0, %c0_i32 : i32, i32
  }
  func.func @transform_1(%arg0: i32) -> (i32, i32) {
    %c0_i32 = arith.constant 0 : i32
    %c0_i32_0 = arith.constant 0 : i32
    %c0_i32_1 = arith.constant 0 : i32
    return %c0_i32, %c0_i32_0 : i32, i32
  }
  func.func @transform_2(%arg0: i32) -> (i32, i32) {
    %c0_i32 = arith.constant 0 : i32
    %c0_i32_0 = arith.constant 0 : i32
    return %arg0, %c0_i32 : i32, i32
  }
  func.func @transform_3(%arg0: i32) -> (i32, i32) {
    %c0_i32 = arith.constant 0 : i32
    %c0_i32_0 = arith.constant 0 : i32
    %c0_i32_1 = arith.constant 0 : i32
    return %c0_i32, %c0_i32_0 : i32, i32
  }
  func.func @transform_4(%arg0: i32) -> (i32, i32) {
    %c0_i32 = arith.constant 0 : i32
    %c0_i32_0 = arith.constant 0 : i32
    return %arg0, %c0_i32 : i32, i32
  }
}

</mosaic_0001>

<bundles_post_ra>
// kernel: tpu_custom_call.1
= control target key start
LH: loop header
LB: loop body
LE: loop exit
PB: predicated region body
PF: predicated region fallthrough
CT: control target
= control target key end

     0   :  { %9 = vsyncpa [#allocation3], 0  ;;  %s388_s0 = inlined_call_operand.vmem [shape: f32[16,128], index: 0, kind: input, shape index: {}]   ;;  %s389_s1 = inlined_call_operand.hbm [shape: f32[128,128], index: 1, kind: input, shape index: {}]   ;;  %s390_s2 = inlined_call_operand.vmem [shape: s32[16,1], index: 2, kind: input, shape index: {}]   ;;  %s391_s3 = inlined_call_operand.vmem [shape: s32[1,128], index: 3, kind: input, shape index: {}]   ;;  %s392_s4 = inlined_call_operand.hbm [shape: f32[1,1], index: 4, kind: output, shape index: {}]  }
   0x1   :  { %10 = vsyncpa [#allocation4], 0  ;;  %s17_s17 = sshll.u32 %s389_s1, 4  ;;  %s302_s18 = smov [#allocation2]   ;;  %s18_s17 = int_to_ptr.hbm [resolvable:$true] %s17_s17 }
   0x2   :  { %s19_s19 = sshll.u32 %s302_s18, 4  ;;  %s303_s20 = smov 128   ;;  %s20_s19 = int_to_ptr.vmem [resolvable:$true] %s19_s19 }
   0x3   :  { %s304_s21 = smov 8  }
   0x4   :  { %25 = dma.hbm_to_vmem [thread:$0]  %s18_s17, 2048, %s20_s19, [#allocation3], %s303_s20, %s303_s20, %s304_s21  }
   0x5   :  { %298 = dma.done.wait [#allocation3], 2048  }
   0x6   :  { %299 = vsyncadd [#allocation3], 4294965248  ;;  %v51_v0 = vld [vmem:[#allocation2 + $0x78] sm:$0xff]  ;;  %v50_v1 = vld [vmem:[#allocation2 + $0x70] sm:$0xff]  ;;  %v305_v8 = vmov 0   ;;  %v77_v23 = vlaneseq  ;;  %v306_v29 = vmov 0.0  }
   0x7   :  { %54 = vmatpush.xpose.msra.mxu0 %v51_v0  ;;  %223 = vmatpush.xpose.msra.mxu1 %v51_v0  ;;  %v49_v2 = vld [vmem:[#allocation2 + $0x68] sm:$0xff]  ;;  %v48_v3 = vld [vmem:[#allocation2 + $0x60] sm:$0xff]  ;;  %v47_v4 = vld [vmem:[#allocation2 + $0x58] sm:$0xff]  ;;  %s210_s30 = sshll.u32 %s392_s4, 4  ;;  %s307_s7 = smov [#allocation5]   ;;  %s211_s30 = int_to_ptr.hbm [resolvable:$true] %s210_s30 }
   0x8   :  { %v46_v5 = vld [vmem:[#allocation2 + $0x50] sm:$0xff]  ;;  %v93_v6 = vld [vmem:[%s390_s2] sm:$0xff]  ;;  %v45_v7 = vld [vmem:[#allocation2 + $0x48] sm:$0xff]  ;;  %247 = vset.pattern.permute.xlu1 %v305_v8  ;;  %248 = vset.pattern.permute.xlu0 %v305_v8  ;;  %v78_v24 = vshrl.u32 %v77_v23, 7  ;;  %v85_v25 = vand.u32 127, %v77_v23 }
   0x9   :  { %97 = vperm.xlu1 %247, %v93_v6   ;;  %v44_v9 = vld [vmem:[#allocation2 + $0x40] sm:$0xff]  ;;  %v43_v10 = vld [vmem:[#allocation2 + $0x38] sm:$0xff]  ;;  %v94_v11 = vld [vmem:[%s390_s2 + $0x8] sm:$0xff] }
   0xa   :  { %v42_v12 = vld [vmem:[#allocation2 + $0x30] sm:$0xff]  ;;  %v41_v13 = vld [vmem:[#allocation2 + $0x28] sm:$0xff]  ;;  %v40_v14 = vld [vmem:[#allocation2 + $0x20] sm:$0xff]  ;;  %vm86_vm0 = vcmp.lt.s32.totalorder %v85_v25, 16  ;;  %vm87_vm1 = vcmp.ne.s32.totalorder %v78_v24, %v85_v25  ;;  %v79_v31 = vadd.s32 8, %v78_v24 }
   0xb   :  { %55 = vmatpush.xpose.msra.mxu0 %v50_v1  ;;  %224 = vmatpush.xpose.msra.mxu1 %v50_v1  ;;  %v39_v15 = vld [vmem:[#allocation2 + $0x18] sm:$0xff]  ;;  %v38_v16 = vld [vmem:[#allocation2 + $0x10] sm:$0xff]  ;;  %v37_v17 = vld [vmem:[#allocation2 + $0x8] sm:$0xff] }
   0xc   :  { %v34_v18 = vld [vmem:[%s388_s0] sm:$0xff]  ;;  %v35_v19 = vld [vmem:[%s388_s0 + $0x8] sm:$0xff]  ;;  %vm352_vm2 = vmand %vm87_vm1, %vm86_vm0  ;;  %vm88_vm5 = vcmp.ne.s32.totalorder %v79_v31, %v85_v25 }
   0xd   :  { %v36_v20 = vld [vmem:[#allocation2] sm:$0xff]  ;;  %v52_v21 = vmul.f32 14.285714, %v34_v18  ;;  %v53_v22 = vmul.f32 14.285714, %v35_v19  ;;  %vm359_vm6 = vmand %vm88_vm5, %vm86_vm0 }
   0xe   :  { %v249_v26 = vld [vmem:[%s391_s3] ss:$0 sm:$0xff] }
   0xf   :  { %56 = vmatpush.xpose.msra.mxu0 %v49_v2  ;;  %225 = vmatpush.xpose.msra.mxu1 %v49_v2 }
  0x11   :  { %100 = vperm.xlu1 %247, %v94_v11  }
  0x13   :  { %57 = vmatpush.xpose.msra.mxu0 %v48_v3  ;;  %226 = vmatpush.xpose.msra.mxu1 %v48_v3 }
  0x17   :  { %58 = vmatpush.xpose.msra.mxu0 %v47_v4  ;;  %227 = vmatpush.xpose.msra.mxu1 %v47_v4 }
  0x1b   :  { %59 = vmatpush.xpose.msra.mxu0 %v46_v5  ;;  %228 = vmatpush.xpose.msra.mxu1 %v46_v5 }
  0x1f   :  { %60 = vmatpush.xpose.msra.mxu0 %v45_v7  ;;  %229 = vmatpush.xpose.msra.mxu1 %v45_v7 }
  0x23   :  { %61 = vmatpush.xpose.msra.mxu0 %v44_v9  ;;  %230 = vmatpush.xpose.msra.mxu1 %v44_v9 }
  0x27   :  { %62 = vmatpush.xpose.msra.mxu0 %v43_v10  ;;  %231 = vmatpush.xpose.msra.mxu1 %v43_v10 }
  0x2b   :  { %63 = vmatpush.xpose.msra.mxu0 %v42_v12  ;;  %232 = vmatpush.xpose.msra.mxu1 %v42_v12 }
  0x2f   :  { %64 = vmatpush.xpose.msra.mxu0 %v41_v13  ;;  %233 = vmatpush.xpose.msra.mxu1 %v41_v13 }
  0x33   :  { %65 = vmatpush.xpose.msra.mxu0 %v40_v14  ;;  %234 = vmatpush.xpose.msra.mxu1 %v40_v14 }
  0x37   :  { %66 = vmatpush.xpose.msra.mxu0 %v39_v15  ;;  %235 = vmatpush.xpose.msra.mxu1 %v39_v15 }
  0x3b   :  { %67 = vmatpush.xpose.msra.mxu0 %v38_v16  ;;  %236 = vmatpush.xpose.msra.mxu1 %v38_v16 }
  0x3f   :  { %68 = vmatpush.xpose.msra.mxu0 %v37_v17  ;;  %237 = vmatpush.xpose.msra.mxu1 %v37_v17 }
  0x43   :  { %69 = vmatpush.xpose.msra.mxu0 %v36_v20  ;;  %238 = vmatpush.xpose.msra.mxu1 %v36_v20 }
  0x46   :  { %70 = vmatmul.f32.vlgmr.msra.gmra.mxu0 %v52_v21  ;;  %73 = vmatmul.f32.vlgmr.msra.gmra.mxu1 %v53_v22 }
  0x7b   :  { %v98_v28 = vpop.permute.xlu1 %97 }
  0x7c   :  { %vm103_vm3 = vcmp.eq.s32.totalorder %v98_v28, %v249_v26 }
  0x7d   :  { %vm105_vm4 = vmand %vm103_vm3, %vm352_vm2  ;;  %vm189_vm3 = vcmask 7168  }
  0x7e   :  { %v221_v30 = vsel %vm105_vm4, 1.0, %v306_v29 }
  0x7f   :  { %139 = vadd.xlane.f32.xlu2 %v221_v30 }
  0x83   :  { %v101_v33 = vpop.permute.xlu1 %100 }
  0x84   :  { %vm104_vm7 = vcmp.eq.s32.totalorder %v101_v33, %v249_v26 }
  0x85   :  { %vm365_vm8 = vmand %vm104_vm7, %vm359_vm6 }
  0x86   :  { %v222_v35 = vsel %vm365_vm8, 1.0, %v306_v29 }
  0x87   :  { %141 = vadd.xlane.f32.xlu2 %v222_v35 }
  0xc3   :  { %v71_v36 = vpop.f32.mrf.mxu0  ;;  %v74_v39 = vpop.f32.mrf.mxu1 }
  0xc4   :  { %v129_v37 = vsel %vm105_vm4, %v71_v36, 0.0  ;;  %v109_v38 = vsel %vm86_vm0, %v71_v36, -1e+30  ;;  %v110_v40 = vsel %vm86_vm0, %v74_v39, -1e+30  ;;  %v130_v50 = vsel %vm365_vm8, %v74_v39, 0.0 }
  0xc5   :  { %131 = vadd.xlane.f32.xlu2 %v129_v37  ;;  %111 = vmax.xlane.f32.xlu0 %v109_v38 }
  0xcd   :  { %113 = vmax.xlane.f32.xlu0 %v110_v40 }
  0xf2   :  { %v140_v52 = vpop.xlane.xlu2 %139 }
  0xf3   :  { %vm153_vm9 = vcmp.gt.f32.partialorder %v140_v52, 0.0 }
  0xf4   :  { %v155_v54 = vsel %vm153_vm9, %v140_v52, 1.0 }
  0xf5   :  { %vm162_vm11 = vweird.f32 %v155_v54  ;;  %v168_v7 = vand.u32 2147483648, %v155_v54  ;;  %v166_v10 = vand.u32 2147483647, %v155_v54 }
  0xf7   :  { %v169_v18 = vor.u32 1.1754944e-38, %v168_v7  ;;  %vm167_vm1 = vcmp.eq.f32.partialorder %v166_v10, 8.507059e+37 }
  0xfa   :  { %v142_v53 = vpop.xlane.xlu2 %141 }
  0xfb   :  { %vm154_vm10 = vcmp.gt.f32.partialorder %v142_v53, 0.0 }
  0xfc   :  { %v156_v55 = vsel %vm154_vm10, %v142_v53, 1.0 }
  0xfd   :  { %vm177_vm13 = vweird.f32 %v156_v55  ;;  %v183_v12 = vand.u32 2147483648, %v156_v55  ;;  %v181_v16 = vand.u32 2147483647, %v156_v55 }
  0xff   :  { %v184_v22 = vor.u32 1.1754944e-38, %v183_v12 }
 0x138   :  { %v112_v41 = vpop.xlane.xlu0 %111  ;;  %v132_v17 = vpop.xlane.xlu2 %131 }
 0x139   :  { %v115_v42 = vsub.f32 %v71_v36, %v112_v41 }
 0x13b   :  { %v117_v43 = vmul.f32 1.442695, %v115_v42 }
 0x13d   :  { %250 = vpow2.f32 %v117_v43 }
 0x140   :  { %v114_v44 = vpop.xlane.xlu0 %113 }
 0x141   :  { %v116_v45 = vsub.f32 %v74_v39, %v114_v44 }
 0x143   :  { %v251_v46 = vpop.eup %250  ;;  %v119_v47 = vmul.f32 1.442695, %v116_v45 }
 0x144   :  { %v121_v48 = vsel %vm352_vm2, %v251_v46, 0.0  ;;  %vm182_vm2 = vcmp.eq.f32.partialorder %v181_v16, 8.507059e+37 }
 0x145   :  { %252 = vpow2.f32 %v119_v47  ;;  %123 = vadd.xlane.f32.xlu0 %v121_v48 }
 0x146   :  { %254 = vrcp.f32 %v155_v54 }
 0x147   :  { %256 = vrcp.f32 %v156_v55 }
 0x14b   :  { %v253_v49 = vpop.eup %252 }
 0x14c   :  { %v122_v51 = vsel %vm359_vm6, %v253_v49, 0.0  ;;  %v255_v57 = vpop.eup %254 }
 0x14d   :  { %133 = vadd.xlane.f32.xlu0 %v130_v50  ;;  %125 = vadd.xlane.f32.xlu1 %v122_v51  ;;  %v257_v59 = vpop.eup %256  ;;  %v158_v60 = vmul.f32 %v255_v57, %v155_v54  ;;  %vm163_vm12 = vweird.f32 %v255_v57 }
 0x14e   :  { %v173_v61 = vmul.f32 %v257_v59, %v156_v55  ;;  %vm178_vm14 = vweird.f32 %v257_v59  ;;  %vm379_vm15 = vmor %vm162_vm11, %vm163_vm12 }
 0x14f   :  { %v159_v62 = vsub.f32 1.0, %v158_v60  ;;  %vm179_vm0 = vmor %vm177_vm13, %vm178_vm14 }
 0x150   :  { %v174_v2 = vsub.f32 1.0, %v173_v61 }
 0x151   :  { %v160_v4 = vmul.f32 %v255_v57, %v159_v62 }
 0x152   :  { %v175_v6 = vmul.f32 %v257_v59, %v174_v2 }
 0x153   :  { %v161_v9 = vadd.f32 %v255_v57, %v160_v4 }
 0x154   :  { %v176_v15 = vadd.f32 %v257_v59, %v175_v6 }
 0x155   :  { %v165_v21 = vsel %vm379_vm15, %v255_v57, %v161_v9 }
 0x156   :  { %v180_v24 = vsel %vm179_vm0, %v257_v59, %v176_v15  ;;  %v170_v26 = vsel %vm167_vm1, %v169_v18, %v165_v21 }
 0x157   :  { %v185_v29 = vsel %vm182_vm2, %v184_v22, %v180_v24 }
 0x1b8   :  { %v124_v56 = vpop.xlane.xlu0 %123 }
 0x1b9   :  { %v127_v58 = vmax.f32 %v124_v56, 1e-30 }
 0x1bb   :  { %258 = vlog2.f32 %v127_v58 }
 0x1c0   :  { %v126_v63 = vpop.xlane.xlu1 %125  ;;  %v134_v25 = vpop.xlane.xlu0 %133 }
 0x1c1   :  { %v259_v0 = vpop.eup %258  ;;  %v128_v1 = vmax.f32 %v126_v63, 1e-30 }
 0x1c2   :  { %v144_v3 = vmul.f32 0.6931472, %v259_v0 }
 0x1c3   :  { %260 = vlog2.f32 %v128_v1 }
 0x1c4   :  { %v147_v5 = vadd.f32 %v144_v3, %v112_v41 }
 0x1c6   :  { %v149_v8 = vmul.f32 %v147_v5, %v140_v52 }
 0x1c8   :  { %v151_v20 = vsub.f32 %v132_v17, %v149_v8 }
 0x1c9   :  { %v261_v11 = vpop.eup %260 }
 0x1ca   :  { %v146_v14 = vmul.f32 0.6931472, %v261_v11  ;;  %v171_v28 = vmul.f32 %v170_v26, %v151_v20 }
 0x1cc   :  { %v148_v19 = vadd.f32 %v146_v14, %v114_v44  ;;  %v190_v31 = vsel %vm189_vm3, %v171_v28, 0.0 }
 0x1ce   :  { %v150_v23 = vmul.f32 %v148_v19, %v142_v53 }
 0x1d0   :  { %v152_v27 = vsub.f32 %v134_v25, %v150_v23 }
 0x1d2   :  { %v186_v30 = vmul.f32 %v185_v29, %v152_v27 }
 0x1d4   :  { %v191_v32 = vsel %vm189_vm3, %v186_v30, 0.0 }
 0x1d5   :  { %v192_v33 = vadd.f32 %v191_v32, %v190_v31 }
 0x1d7   :  { %193 = vadd.xlane.f32.xlu2 %v192_v33 }
 0x24a   :  { %v194_v34 = vpop.xlane.xlu2 %193 }
 0x24b   :  { %v195_v35 = vrot.slane %v194_v34, 4 }
 0x24d   :  { %v196_v36 = vadd.f32 %v195_v35, %v194_v34 }
 0x24f   :  { %v197_v37 = vrot.slane %v196_v36, 2 }
 0x251   :  { %v198_v38 = vadd.f32 %v197_v37, %v196_v36 }
 0x253   :  { %v199_v39 = vrot.slane %v198_v38, 1 }
 0x255   :  { %v200_v40 = vadd.f32 %v199_v39, %v198_v38 }
 0x257   :  { %239 = vpush %v200_v40 }
 0x288   :  { %s240_s5 = spop %239 }
 0x289   :  { %s202_s6 = smul.f32 -0.0625, %s240_s5 }
 0x28b   :  { %204 = sst [smem:[#allocation5]] %s202_s6 }
 0x28c   :  { %213 = dma.smem_to_hbm %s307_s7, 16, %s211_s30, [#allocation4]  }
 0x28d   :  { %300 = dma.done.wait [#allocation4], 16  }
 0x28e   :  { %301 = vsyncadd [#allocation4], 4294967280 }
 0x28f   :  { %218 = sfence }
 0x290   :  { %219 = vsyncpa [#allocation3], 1 }
 0x291   :  { %220 = vsyncpa [#allocation4], 1 }

</bundles_post_ra>
